<compile_context>
chip_gen: v6e
topology: v6e:2x2x1
jax: 0.10.0
libtpu: 0.0.40
codegen_flags: <defaults>
</compile_context>

<pallas_src>
import jax
import jax.numpy as jnp
from jax.experimental import pallas as pl
from jax.experimental.pallas import tpu as pltpu


# ---------------------------------------------------------------------------
# Kernel
# ---------------------------------------------------------------------------
def _loss_kernel(o1_ref, o2_ref, lab_ref, nll_ref, col1_ref, col2_ref):
    c = pl.program_id(0)               # 0 = source half, 1 = target half
    i = pl.program_id(1)               # row-tile index inside the half
    tile_rows, num_classes = o1_ref.shape
    n_sub = tile_rows // 8

    # Outputs double as resident accumulators: their block index depends only
    # on the core axis, so they stay in VMEM across the whole inner axis.
    @pl.when(i == 0)
    def _init():
        nll_ref[...] = jnp.zeros_like(nll_ref)
        col1_ref[...] = jnp.zeros_like(col1_ref)
        col2_ref[...] = jnp.zeros_like(col2_ref)

    def sublane_partial(x):
        # (tile_rows, d) -> (8, d): tree-sum of 8-row groups. 8-aligned static
        # slices (no repack) + plain VALU vreg adds; the single 8->1
        # cross-sublane (XLU) reduce is deferred to the wrapper.
        parts = [x[s * 8:(s + 1) * 8, :] for s in range(n_sub)]
        while len(parts) > 1:
            nxt = [a + b for a, b in zip(parts[0::2], parts[1::2])]
            if len(parts) % 2:
                nxt.append(parts[-1])
            parts = nxt
        return parts[0]

    @pl.when(c == 0)
    def _source_tile():
        # Cross-entropy: nll = max + log(sum(exp)) - logit[label].
        lab = lab_ref[...]                                          # (T, 1)
        col_ids = jax.lax.broadcasted_iota(
            jnp.int32, (tile_rows, num_classes), 1)
        label_mask = col_ids == lab                                  # (T, C)

        def nll_rows(o_ref):
            x = o_ref[...].astype(jnp.float32)
            m = jnp.max(x, axis=1, keepdims=True)
            s = jnp.sum(jnp.exp(x - m), axis=1, keepdims=True)
            logit_y = jnp.sum(jnp.where(label_mask, x, 0.0),
                              axis=1, keepdims=True)
            return m + jnp.log(s) - logit_y                          # (T, 1)

        nll_ref[0] = nll_ref[0] + sublane_partial(
            nll_rows(o1_ref) + nll_rows(o2_ref))                     # (8, 1)

    @pl.when(c == 1)
    def _target_tile():
        # Softmax column sums for the entropy term (no masks: pure target tile).
        def col_partial(o_ref):
            x = o_ref[...].astype(jnp.float32)
            m = jnp.max(x, axis=1, keepdims=True)
            e = jnp.exp(x - m)
            s = jnp.sum(e, axis=1, keepdims=True)
            inv = pl.reciprocal(s, approx=True)                      # (T, 1)
            return sublane_partial(e * inv)                          # (8, C)

        col1_ref[0] = col1_ref[0] + col_partial(o1_ref)
        col2_ref[0] = col2_ref[0] + col_partial(o2_ref)


# ---------------------------------------------------------------------------
# Tiling / dispatch helpers
# ---------------------------------------------------------------------------
def _sublane_rows(dtype):
    return max(8, 32 // jnp.dtype(dtype).itemsize)   # 8 f32, 16 bf16, 32 int8


def _vmem_limit_bytes():
    cap = 64 * 1024 * 1024                           # conservative (v7x-sized)
    try:
        cap = int(getattr(pltpu.get_tpu_info(), "vmem_capacity_bytes", cap))
    except Exception:
        pass
    # 3/4 of physical, capped at 100 MiB: ~48 MiB on v7x, ~96 MiB on v5e/v6e.
    return max(32 * 1024 * 1024, min(cap * 3 // 4, 100 * 1024 * 1024))


def _choose_tile_rows(batch_size, num_classes, dtype, vmem_limit_bytes):
    sublane = _sublane_rows(dtype)
    if batch_size % sublane:
        return None
    itemsize = jnp.dtype(dtype).itemsize
    # VMEM bytes per tile row:
    #   2 heads x 2 pipeline buffers of the raw input block
    # + ~3 live f32 (rows, C) temporaries per head inside the body.
    bytes_per_row = 2 * 2 * num_classes * itemsize + 2 * 3 * num_classes * 4
    cap = int(vmem_limit_bytes * 0.6) // bytes_per_row
    cap = max(sublane, min(cap, 2048))
    cap = cap // sublane * sublane
    t = min(cap, batch_size) // sublane * sublane
    while t > sublane and batch_size % t:
        t -= sublane
    return t if batch_size % t == 0 else None


# ---------------------------------------------------------------------------
# Fused XLA fallback (also serves as the numerical reference)
# ---------------------------------------------------------------------------
def _xla_loss(output1, output2, label, batch_size):
    B = batch_size
    o1 = output1.astype(jnp.float32)
    o2 = output2.astype(jnp.float32)
    s1, t1 = o1[:B], o1[B:]
    s2, t2 = o2[:B], o2[B:]
    pt1 = jax.nn.softmax(t1, axis=1)
    pt2 = jax.nn.softmax(t2, axis=1)
    entropy = (-jnp.mean(jnp.log(jnp.mean(pt1, axis=0) + 1e-6))
               - jnp.mean(jnp.log(jnp.mean(pt2, axis=0) + 1e-6)))

    def ce(x):
        ls = jax.nn.log_softmax(x, axis=1)
        idx = label.astype(jnp.int32)[:, None]
        return -jnp.mean(jnp.take_along_axis(ls, idx, axis=1))

    return ce(s1) + ce(s2) + 0.01 * entropy


# ---------------------------------------------------------------------------
# Pallas path
# ---------------------------------------------------------------------------
def _pallas_loss(output1, output2, label, batch_size, tile_rows, vmem_limit):
    _, num_classes = output1.shape
    n_inner = batch_size // tile_rows
    label_col = label.astype(jnp.int32).reshape(batch_size, 1)

    logits_map = lambda c, i: (c * n_inner + i, 0)     # noqa: E731

    nll_p, col1_p, col2_p = pl.pallas_call(
        _loss_kernel,
        out_shape=(
            jax.ShapeDtypeStruct((2, 8, 1), jnp.float32),
            jax.ShapeDtypeStruct((2, 8, num_classes), jnp.float32),
            jax.ShapeDtypeStruct((2, 8, num_classes), jnp.float32),
        ),
        grid_spec=pltpu.PrefetchScalarGridSpec(
            num_scalar_prefetch=0,
            grid=(2, n_inner),
            in_specs=[
                pl.BlockSpec((tile_rows, num_classes), logits_map),
                pl.BlockSpec((tile_rows, num_classes), logits_map),
                pl.BlockSpec((tile_rows, 1), lambda c, i: (i, 0)),
            ],
            out_specs=[
                pl.BlockSpec((1, 8, 1), lambda c, i: (c, 0, 0)),
                pl.BlockSpec((1, 8, num_classes), lambda c, i: (c, 0, 0)),
                pl.BlockSpec((1, 8, num_classes), lambda c, i: (c, 0, 0)),
            ],
        ),
        compiler_params=pltpu.CompilerParams(
            dimension_semantics=("parallel", "arbitrary"),
            vmem_limit_bytes=vmem_limit,
        ),
    )(output1, output2, label_col)

    # Tiny combine in XLA: core 0 contributes nll partials (zeros elsewhere),
    # core 1 contributes softmax column sums (zeros elsewhere).
    inv_b = jnp.float32(1.0 / batch_size)
    ce = jnp.sum(nll_p) * inv_b
    mean1 = jnp.sum(col1_p, axis=(0, 1)) * inv_b       # (C,)
    mean2 = jnp.sum(col2_p, axis=(0, 1)) * inv_b
    entropy = (-jnp.mean(jnp.log(mean1 + 1e-6))
               - jnp.mean(jnp.log(mean2 + 1e-6)))
    return ce + 0.01 * entropy


def source_only_loss(output1, output2, label, *, batch_size,
                     tile_rows=None, use_pallas=None):
    """output1/output2: (2*batch_size, C) logits, label: (batch_size,) int."""
    total_rows, num_classes = output1.shape
    assert output2.shape == output1.shape
    assert total_rows == 2 * batch_size

    vmem_limit = _vmem_limit_bytes()
    auto_tile = _choose_tile_rows(batch_size, num_classes,
                                  output1.dtype, vmem_limit)

    if use_pallas is None:
        # Tiny / lane-sparse / misaligned problems: a fused XLA reduction beats
        # a pallas_call that would be pure grid-step overhead.
        big_enough = (total_rows * num_classes *
                      jnp.dtype(output1.dtype).itemsize) >= (1 << 20)
        use_pallas = (auto_tile is not None) and big_enough

    if not use_pallas:
        return _xla_loss(output1, output2, label, batch_size)

    if tile_rows is None:
        tile_rows = auto_tile
    sublane = _sublane_rows(output1.dtype)
    assert (tile_rows is not None and tile_rows % sublane == 0
            and batch_size % tile_rows == 0), \
        "Pallas path needs batch_size divisible by a sublane-aligned tile"
    return _pallas_loss(output1, output2, label, batch_size,
                        tile_rows, vmem_limit)


# ---------------------------------------------------------------------------
# Self-test
# ---------------------------------------------------------------------------
if __name__ == "__main__":
    def make_inputs(key, batch_size, num_classes, dtype=jnp.float32):
        k1, k2, k3 = jax.random.split(key, 3)
        o1 = jax.random.normal(k1, (2 * batch_size, num_classes),
                               dtype=jnp.float32).astype(dtype)
        o2 = jax.random.normal(k2, (2 * batch_size, num_classes),
                               dtype=jnp.float32).astype(dtype)
        lab = jax.random.randint(k3, (batch_size,), 0, num_classes,
                                 dtype=jnp.int32)
        return o1, o2, lab

    key = jax.random.PRNGKey(0)
    k1, k2, k3 = jax.random.split(key, 3)

    # 1) Pallas path, single inner tile per half (grid (2, 1)).
    o1, o2, lab = make_inputs(k1, batch_size=64, num_classes=16)
    loss = jax.block_until_ready(
        source_only_loss(o1, o2, lab, batch_size=64, use_pallas=True))
    ref = _xla_loss(o1, o2, lab, 64)
    assert jnp.allclose(loss, ref, rtol=1e-4, atol=1e-5), (loss, ref)

    # 2) Pallas path, multiple inner tiles (exercises init + accumulate).
    loss = jax.block_until_ready(
        source_only_loss(o1, o2, lab, batch_size=64, tile_rows=16,
                         use_pallas=True))
    assert jnp.allclose(loss, ref, rtol=1e-4, atol=1e-5), (loss, ref)

    # 3) bf16 inputs (16-row sublane packing path).
    b1, b2, blab = make_inputs(k2, batch_size=32, num_classes=16,
                               dtype=jnp.bfloat16)
    loss_bf = jax.block_until_ready(
        source_only_loss(b1, b2, blab, batch_size=32, use_pallas=True))
    ref_bf = _xla_loss(b1, b2, blab, 32)
    assert jnp.allclose(loss_bf, ref_bf, rtol=1e-3, atol=1e-3), (loss_bf, ref_bf)

    # 4) Original tiny config (batch_size=4, nc=4 -> 8 classes):
    #    auto-dispatch routes to the fused XLA path.
    t1, t2, tlab = make_inputs(k3, batch_size=4, num_classes=8)
    loss_t = jax.block_until_ready(
        source_only_loss(t1, t2, tlab, batch_size=4))
    ref_t = _xla_loss(t1, t2, tlab, 4)
    assert jnp.allclose(loss_t, ref_t, rtol=1e-5, atol=1e-6), (loss_t, ref_t)

    print("KERNEL_OK")
</pallas_src>

<mosaic_0001>
module attributes {stable_mosaic.version = 11 : i64} {
  func.func @_loss_kernel(%arg0: i32, %arg1: i32, %arg2: memref<64x16xf32, #tpu.memory_space<vmem>>, %arg3: memref<64x16xf32, #tpu.memory_space<vmem>>, %arg4: memref<64x1xi32, #tpu.memory_space<vmem>>, %arg5: memref<1x8x1xf32, #tpu.memory_space<vmem>>, %arg6: memref<1x8x16xf32, #tpu.memory_space<vmem>>, %arg7: memref<1x8x16xf32, #tpu.memory_space<vmem>>) attributes {dimension_semantics = [#tpu.dimension_semantics<parallel>, #tpu.dimension_semantics<arbitrary>], iteration_bounds = array<i64: 2, 1>, scalar_prefetch = 0 : i64, scratch_operands = 0 : i64, tpu.core_type = #tpu.core_type<tc>, window_params = [{transform_indices = @transform_0, window_bounds = array<i64: 64, 16>}, {transform_indices = @transform_1, window_bounds = array<i64: 64, 16>}, {transform_indices = @transform_2, window_bounds = array<i64: 64, 1>}, {transform_indices = @transform_3, window_bounds = array<i64: 1, 8, 1>}, {transform_indices = @transform_4, window_bounds = array<i64: 1, 8, 16>}, {transform_indices = @transform_5, window_bounds = array<i64: 1, 8, 16>}]} {
    %c0_i32 = arith.constant 0 : i32
    %0 = arith.cmpi eq, %arg1, %c0_i32 : i32
    %1 = arith.extui %0 : i1 to i32
    %c0_i32_0 = arith.constant 0 : i32
    %2 = arith.cmpi ne, %1, %c0_i32_0 : i32
    scf.if %2 {
      %cst = arith.constant 0.000000e+00 : f32
      %9 = vector.broadcast %cst : f32 to vector<1x8x1xf32>
      %c0 = arith.constant 0 : index
      %c0_4 = arith.constant 0 : index
      %c0_5 = arith.constant 0 : index
      %10 = vector.load %arg5[%c0, %c0_4, %c0_5] : memref<1x8x1xf32, #tpu.memory_space<vmem>>, vector<1x8x1xf32>
      tpu.vector_store %arg5[%c0, %c0_4, %c0_5], %9 {strides = array<i32>} : memref<1x8x1xf32, #tpu.memory_space<vmem>>, vector<1x8x1xf32>,
      %cst_6 = arith.constant 0.000000e+00 : f32
      %11 = vector.broadcast %cst_6 : f32 to vector<1x8x16xf32>
      %c0_7 = arith.constant 0 : index
      %c0_8 = arith.constant 0 : index
      %c0_9 = arith.constant 0 : index
      %12 = vector.load %arg6[%c0_7, %c0_8, %c0_9] : memref<1x8x16xf32, #tpu.memory_space<vmem>>, vector<1x8x16xf32>
      tpu.vector_store %arg6[%c0_7, %c0_8, %c0_9], %11 {strides = array<i32>} : memref<1x8x16xf32, #tpu.memory_space<vmem>>, vector<1x8x16xf32>,
      %cst_10 = arith.constant 0.000000e+00 : f32
      %13 = vector.broadcast %cst_10 : f32 to vector<1x8x16xf32>
      %c0_11 = arith.constant 0 : index
      %c0_12 = arith.constant 0 : index
      %c0_13 = arith.constant 0 : index
      %14 = vector.load %arg7[%c0_11, %c0_12, %c0_13] : memref<1x8x16xf32, #tpu.memory_space<vmem>>, vector<1x8x16xf32>
      tpu.vector_store %arg7[%c0_11, %c0_12, %c0_13], %13 {strides = array<i32>} : memref<1x8x16xf32, #tpu.memory_space<vmem>>, vector<1x8x16xf32>,
    } else {
    }
    %c0_i32_1 = arith.constant 0 : i32
    %3 = arith.cmpi eq, %arg0, %c0_i32_1 : i32
    %4 = arith.extui %3 : i1 to i32
    %c0_i32_2 = arith.constant 0 : i32
    %5 = arith.cmpi ne, %4, %c0_i32_2 : i32
    scf.if %5 {
      %c0 = arith.constant 0 : index
      %c0_4 = arith.constant 0 : index
      %9 = vector.load %arg4[%c0, %c0_4] : memref<64x1xi32, #tpu.memory_space<vmem>>, vector<64x1xi32>
      %10 = tpu.iota {dimensions = array<i32: 1>} : vector<64x16xi32>
      %11 = vector.broadcast %9 : vector<64x1xi32> to vector<64x16xi32>
      %12 = arith.cmpi eq, %10, %11 : vector<64x16xi32>
      %c0_5 = arith.constant 0 : index
      %c0_6 = arith.constant 0 : index
      %c0_7 = arith.constant 0 : index
      %13 = vector.load %arg5[%c0_5, %c0_6, %c0_7] : memref<1x8x1xf32, #tpu.memory_space<vmem>>, vector<1x8x1xf32>
      %14 = vector.shape_cast %13 : vector<1x8x1xf32> to vector<8x1xf32>
      %c0_8 = arith.constant 0 : index
      %c0_9 = arith.constant 0 : index
      %15 = vector.load %arg2[%c0_8, %c0_9] : memref<64x16xf32, #tpu.memory_space<vmem>>, vector<64x16xf32>
      %cst = arith.constant dense<0xFF800000> : vector<64xf32>
      %16 = vector.multi_reduction <maximumf>, %15, %cst [1] : vector<64x16xf32> to vector<64xf32>
      %17 = vector.shape_cast %16 : vector<64xf32> to vector<64x1xf32>
      %18 = vector.broadcast %17 : vector<64x1xf32> to vector<64x16xf32>
      %19 = arith.subf %15, %18 : vector<64x16xf32>
      %20 = math.exp %19 : vector<64x16xf32>
      %cst_10 = arith.constant dense<0.000000e+00> : vector<64xf32>
      %21 = vector.multi_reduction <add>, %20, %cst_10 [1] : vector<64x16xf32> to vector<64xf32>
      %22 = vector.shape_cast %21 : vector<64xf32> to vector<64x1xf32>
      %cst_11 = arith.constant 0.000000e+00 : f32
      %23 = vector.broadcast %cst_11 : f32 to vector<64x16xf32>
      %24 = arith.select %12, %15, %23 : vector<64x16xi1>, vector<64x16xf32>
      %cst_12 = arith.constant dense<0.000000e+00> : vector<64xf32>
      %25 = vector.multi_reduction <add>, %24, %cst_12 [1] : vector<64x16xf32> to vector<64xf32>
      %26 = vector.shape_cast %25 : vector<64xf32> to vector<64x1xf32>
      %27 = math.log %22 : vector<64x1xf32>
      %28 = arith.addf %17, %27 : vector<64x1xf32>
      %29 = arith.subf %28, %26 : vector<64x1xf32>
      %c0_13 = arith.constant 0 : index
      %c0_14 = arith.constant 0 : index
      %30 = vector.load %arg3[%c0_13, %c0_14] : memref<64x16xf32, #tpu.memory_space<vmem>>, vector<64x16xf32>
      %cst_15 = arith.constant dense<0xFF800000> : vector<64xf32>
      %31 = vector.multi_reduction <maximumf>, %30, %cst_15 [1] : vector<64x16xf32> to vector<64xf32>
      %32 = vector.shape_cast %31 : vector<64xf32> to vector<64x1xf32>
      %33 = vector.broadcast %32 : vector<64x1xf32> to vector<64x16xf32>
      %34 = arith.subf %30, %33 : vector<64x16xf32>
      %35 = math.exp %34 : vector<64x16xf32>
      %cst_16 = arith.constant dense<0.000000e+00> : vector<64xf32>
      %36 = vector.multi_reduction <add>, %35, %cst_16 [1] : vector<64x16xf32> to vector<64xf32>
      %37 = vector.shape_cast %36 : vector<64xf32> to vector<64x1xf32>
      %cst_17 = arith.constant 0.000000e+00 : f32
      %38 = vector.broadcast %cst_17 : f32 to vector<64x16xf32>
      %39 = arith.select %12, %30, %38 : vector<64x16xi1>, vector<64x16xf32>
      %cst_18 = arith.constant dense<0.000000e+00> : vector<64xf32>
      %40 = vector.multi_reduction <add>, %39, %cst_18 [1] : vector<64x16xf32> to vector<64xf32>
      %41 = vector.shape_cast %40 : vector<64xf32> to vector<64x1xf32>
      %42 = math.log %37 : vector<64x1xf32>
      %43 = arith.addf %32, %42 : vector<64x1xf32>
      %44 = arith.subf %43, %41 : vector<64x1xf32>
      %45 = arith.addf %29, %44 : vector<64x1xf32>
      %46 = vector.extract_strided_slice %45 {offsets = [0, 0], sizes = [8, 1], strides = [1, 1]} : vector<64x1xf32> to vector<8x1xf32>
      %47 = vector.extract_strided_slice %45 {offsets = [8, 0], sizes = [8, 1], strides = [1, 1]} : vector<64x1xf32> to vector<8x1xf32>
      %48 = vector.extract_strided_slice %45 {offsets = [16, 0], sizes = [8, 1], strides = [1, 1]} : vector<64x1xf32> to vector<8x1xf32>
      %49 = vector.extract_strided_slice %45 {offsets = [24, 0], sizes = [8, 1], strides = [1, 1]} : vector<64x1xf32> to vector<8x1xf32>
      %50 = vector.extract_strided_slice %45 {offsets = [32, 0], sizes = [8, 1], strides = [1, 1]} : vector<64x1xf32> to vector<8x1xf32>
      %51 = vector.extract_strided_slice %45 {offsets = [40, 0], sizes = [8, 1], strides = [1, 1]} : vector<64x1xf32> to vector<8x1xf32>
      %52 = vector.extract_strided_slice %45 {offsets = [48, 0], sizes = [8, 1], strides = [1, 1]} : vector<64x1xf32> to vector<8x1xf32>
      %53 = vector.extract_strided_slice %45 {offsets = [56, 0], sizes = [8, 1], strides = [1, 1]} : vector<64x1xf32> to vector<8x1xf32>
      %54 = arith.addf %46, %47 : vector<8x1xf32>
      %55 = arith.addf %48, %49 : vector<8x1xf32>
      %56 = arith.addf %50, %51 : vector<8x1xf32>
      %57 = arith.addf %52, %53 : vector<8x1xf32>
      %58 = arith.addf %54, %55 : vector<8x1xf32>
      %59 = arith.addf %56, %57 : vector<8x1xf32>
      %60 = arith.addf %58, %59 : vector<8x1xf32>
      %61 = arith.addf %14, %60 : vector<8x1xf32>
      %c0_19 = arith.constant 0 : index
      %c0_20 = arith.constant 0 : index
      %c0_21 = arith.constant 0 : index
      %62 = vector.load %arg5[%c0_19, %c0_20, %c0_21] : memref<1x8x1xf32, #tpu.memory_space<vmem>>, vector<1x8x1xf32>
      %63 = vector.shape_cast %62 : vector<1x8x1xf32> to vector<8x1xf32>
      %64 = vector.shape_cast %61 : vector<8x1xf32> to vector<1x8x1xf32>
      tpu.vector_store %arg5[%c0_19, %c0_20, %c0_21], %64 {strides = array<i32>} : memref<1x8x1xf32, #tpu.memory_space<vmem>>, vector<1x8x1xf32>,
    } else {
    }
    %c1_i32 = arith.constant 1 : i32
    %6 = arith.cmpi eq, %arg0, %c1_i32 : i32
    %7 = arith.extui %6 : i1 to i32
    %c0_i32_3 = arith.constant 0 : i32
    %8 = arith.cmpi ne, %7, %c0_i32_3 : i32
    scf.if %8 {
      %c0 = arith.constant 0 : index
      %c0_4 = arith.constant 0 : index
      %c0_5 = arith.constant 0 : index
      %9 = vector.load %arg6[%c0, %c0_4, %c0_5] : memref<1x8x16xf32, #tpu.memory_space<vmem>>, vector<1x8x16xf32>
      %10 = vector.shape_cast %9 : vector<1x8x16xf32> to vector<8x16xf32>
      %c0_6 = arith.constant 0 : index
      %c0_7 = arith.constant 0 : index
      %11 = vector.load %arg2[%c0_6, %c0_7] : memref<64x16xf32, #tpu.memory_space<vmem>>, vector<64x16xf32>
      %cst = arith.constant dense<0xFF800000> : vector<64xf32>
      %12 = vector.multi_reduction <maximumf>, %11, %cst [1] : vector<64x16xf32> to vector<64xf32>
      %13 = vector.shape_cast %12 : vector<64xf32> to vector<64x1xf32>
      %14 = vector.broadcast %13 : vector<64x1xf32> to vector<64x16xf32>
      %15 = arith.subf %11, %14 : vector<64x16xf32>
      %16 = math.exp %15 : vector<64x16xf32>
      %cst_8 = arith.constant dense<0.000000e+00> : vector<64xf32>
      %17 = vector.multi_reduction <add>, %16, %cst_8 [1] : vector<64x16xf32> to vector<64xf32>
      %18 = vector.shape_cast %17 : vector<64xf32> to vector<64x1xf32>
      %19 = tpu.reciprocal %18 {approx = true} : vector<64x1xf32> -> vector<64x1xf32>
      %20 = vector.broadcast %19 : vector<64x1xf32> to vector<64x16xf32>
      %21 = arith.mulf %16, %20 : vector<64x16xf32>
      %22 = vector.extract_strided_slice %21 {offsets = [0, 0], sizes = [8, 16], strides = [1, 1]} : vector<64x16xf32> to vector<8x16xf32>
      %23 = vector.extract_strided_slice %21 {offsets = [8, 0], sizes = [8, 16], strides = [1, 1]} : vector<64x16xf32> to vector<8x16xf32>
      %24 = vector.extract_strided_slice %21 {offsets = [16, 0], sizes = [8, 16], strides = [1, 1]} : vector<64x16xf32> to vector<8x16xf32>
      %25 = vector.extract_strided_slice %21 {offsets = [24, 0], sizes = [8, 16], strides = [1, 1]} : vector<64x16xf32> to vector<8x16xf32>
      %26 = vector.extract_strided_slice %21 {offsets = [32, 0], sizes = [8, 16], strides = [1, 1]} : vector<64x16xf32> to vector<8x16xf32>
      %27 = vector.extract_strided_slice %21 {offsets = [40, 0], sizes = [8, 16], strides = [1, 1]} : vector<64x16xf32> to vector<8x16xf32>
      %28 = vector.extract_strided_slice %21 {offsets = [48, 0], sizes = [8, 16], strides = [1, 1]} : vector<64x16xf32> to vector<8x16xf32>
      %29 = vector.extract_strided_slice %21 {offsets = [56, 0], sizes = [8, 16], strides = [1, 1]} : vector<64x16xf32> to vector<8x16xf32>
      %30 = arith.addf %22, %23 : vector<8x16xf32>
      %31 = arith.addf %24, %25 : vector<8x16xf32>
      %32 = arith.addf %26, %27 : vector<8x16xf32>
      %33 = arith.addf %28, %29 : vector<8x16xf32>
      %34 = arith.addf %30, %31 : vector<8x16xf32>
      %35 = arith.addf %32, %33 : vector<8x16xf32>
      %36 = arith.addf %34, %35 : vector<8x16xf32>
      %37 = arith.addf %10, %36 : vector<8x16xf32>
      %c0_9 = arith.constant 0 : index
      %c0_10 = arith.constant 0 : index
      %c0_11 = arith.constant 0 : index
      %38 = vector.load %arg6[%c0_9, %c0_10, %c0_11] : memref<1x8x16xf32, #tpu.memory_space<vmem>>, vector<1x8x16xf32>
      %39 = vector.shape_cast %38 : vector<1x8x16xf32> to vector<8x16xf32>
      %40 = vector.shape_cast %37 : vector<8x16xf32> to vector<1x8x16xf32>
      tpu.vector_store %arg6[%c0_9, %c0_10, %c0_11], %40 {strides = array<i32>} : memref<1x8x16xf32, #tpu.memory_space<vmem>>, vector<1x8x16xf32>,
      %c0_12 = arith.constant 0 : index
      %c0_13 = arith.constant 0 : index
      %c0_14 = arith.constant 0 : index
      %41 = vector.load %arg7[%c0_12, %c0_13, %c0_14] : memref<1x8x16xf32, #tpu.memory_space<vmem>>, vector<1x8x16xf32>
      %42 = vector.shape_cast %41 : vector<1x8x16xf32> to vector<8x16xf32>
      %c0_15 = arith.constant 0 : index
      %c0_16 = arith.constant 0 : index
      %43 = vector.load %arg3[%c0_15, %c0_16] : memref<64x16xf32, #tpu.memory_space<vmem>>, vector<64x16xf32>
      %cst_17 = arith.constant dense<0xFF800000> : vector<64xf32>
      %44 = vector.multi_reduction <maximumf>, %43, %cst_17 [1] : vector<64x16xf32> to vector<64xf32>
      %45 = vector.shape_cast %44 : vector<64xf32> to vector<64x1xf32>
      %46 = vector.broadcast %45 : vector<64x1xf32> to vector<64x16xf32>
      %47 = arith.subf %43, %46 : vector<64x16xf32>
      %48 = math.exp %47 : vector<64x16xf32>
      %cst_18 = arith.constant dense<0.000000e+00> : vector<64xf32>
      %49 = vector.multi_reduction <add>, %48, %cst_18 [1] : vector<64x16xf32> to vector<64xf32>
      %50 = vector.shape_cast %49 : vector<64xf32> to vector<64x1xf32>
      %51 = tpu.reciprocal %50 {approx = true} : vector<64x1xf32> -> vector<64x1xf32>
      %52 = vector.broadcast %51 : vector<64x1xf32> to vector<64x16xf32>
      %53 = arith.mulf %48, %52 : vector<64x16xf32>
      %54 = vector.extract_strided_slice %53 {offsets = [0, 0], sizes = [8, 16], strides = [1, 1]} : vector<64x16xf32> to vector<8x16xf32>
      %55 = vector.extract_strided_slice %53 {offsets = [8, 0], sizes = [8, 16], strides = [1, 1]} : vector<64x16xf32> to vector<8x16xf32>
      %56 = vector.extract_strided_slice %53 {offsets = [16, 0], sizes = [8, 16], strides = [1, 1]} : vector<64x16xf32> to vector<8x16xf32>
      %57 = vector.extract_strided_slice %53 {offsets = [24, 0], sizes = [8, 16], strides = [1, 1]} : vector<64x16xf32> to vector<8x16xf32>
      %58 = vector.extract_strided_slice %53 {offsets = [32, 0], sizes = [8, 16], strides = [1, 1]} : vector<64x16xf32> to vector<8x16xf32>
      %59 = vector.extract_strided_slice %53 {offsets = [40, 0], sizes = [8, 16], strides = [1, 1]} : vector<64x16xf32> to vector<8x16xf32>
      %60 = vector.extract_strided_slice %53 {offsets = [48, 0], sizes = [8, 16], strides = [1, 1]} : vector<64x16xf32> to vector<8x16xf32>
      %61 = vector.extract_strided_slice %53 {offsets = [56, 0], sizes = [8, 16], strides = [1, 1]} : vector<64x16xf32> to vector<8x16xf32>
      %62 = arith.addf %54, %55 : vector<8x16xf32>
      %63 = arith.addf %56, %57 : vector<8x16xf32>
      %64 = arith.addf %58, %59 : vector<8x16xf32>
      %65 = arith.addf %60, %61 : vector<8x16xf32>
      %66 = arith.addf %62, %63 : vector<8x16xf32>
      %67 = arith.addf %64, %65 : vector<8x16xf32>
      %68 = arith.addf %66, %67 : vector<8x16xf32>
      %69 = arith.addf %42, %68 : vector<8x16xf32>
      %c0_19 = arith.constant 0 : index
      %c0_20 = arith.constant 0 : index
      %c0_21 = arith.constant 0 : index
      %70 = vector.load %arg7[%c0_19, %c0_20, %c0_21] : memref<1x8x16xf32, #tpu.memory_space<vmem>>, vector<1x8x16xf32>
      %71 = vector.shape_cast %70 : vector<1x8x16xf32> to vector<8x16xf32>
      %72 = vector.shape_cast %69 : vector<8x16xf32> to vector<1x8x16xf32>
      tpu.vector_store %arg7[%c0_19, %c0_20, %c0_21], %72 {strides = array<i32>} : memref<1x8x16xf32, #tpu.memory_space<vmem>>, vector<1x8x16xf32>,
    } else {
    }
    return
  }
  func.func @transform_0(%arg0: i32, %arg1: i32) -> (i32, i32) {
    %c1_i32 = arith.constant 1 : i32
    %0 = arith.muli %arg0, %c1_i32 : i32
    %1 = arith.addi %0, %arg1 : i32
    %c0_i32 = arith.constant 0 : i32
    %c0_i32_0 = arith.constant 0 : i32
    return %1, %c0_i32 : i32, i32
  }
  func.func @transform_1(%arg0: i32, %arg1: i32) -> (i32, i32) {
    %c1_i32 = arith.constant 1 : i32
    %0 = arith.muli %arg0, %c1_i32 : i32
    %1 = arith.addi %0, %arg1 : i32
    %c0_i32 = arith.constant 0 : i32
    %c0_i32_0 = arith.constant 0 : i32
    return %1, %c0_i32 : i32, i32
  }
  func.func @transform_2(%arg0: i32, %arg1: i32) -> (i32, i32) {
    %c0_i32 = arith.constant 0 : i32
    %c0_i32_0 = arith.constant 0 : i32
    return %arg1, %c0_i32 : i32, i32
  }
  func.func @transform_3(%arg0: i32, %arg1: i32) -> (i32, i32, i32) {
    %c0_i32 = arith.constant 0 : i32
    %c0_i32_0 = arith.constant 0 : i32
    %c0_i32_1 = arith.constant 0 : i32
    return %arg0, %c0_i32, %c0_i32_0 : i32, i32, i32
  }
  func.func @transform_4(%arg0: i32, %arg1: i32) -> (i32, i32, i32) {
    %c0_i32 = arith.constant 0 : i32
    %c0_i32_0 = arith.constant 0 : i32
    %c0_i32_1 = arith.constant 0 : i32
    return %arg0, %c0_i32, %c0_i32_0 : i32, i32, i32
  }
  func.func @transform_5(%arg0: i32, %arg1: i32) -> (i32, i32, i32) {
    %c0_i32 = arith.constant 0 : i32
    %c0_i32_0 = arith.constant 0 : i32
    %c0_i32_1 = arith.constant 0 : i32
    return %arg0, %c0_i32, %c0_i32_0 : i32, i32, i32
  }
}

</mosaic_0001>

<bundles_post_ra>
// kernel: tpu_custom_call.1
= control target key start
LH: loop header
LB: loop body
LE: loop exit
PB: predicated region body
PF: predicated region fallthrough
CT: control target
= control target key end

     0   :  { %s2074_s0 = inlined_call_operand.vmem [shape: f32[128,16], index: 0, kind: input, shape index: {}]   ;;  %s2075_s1 = inlined_call_operand.vmem [shape: f32[128,16], index: 1, kind: input, shape index: {}]   ;;  %s2076_s2 = inlined_call_operand.vmem [shape: s32[64,1], index: 2, kind: input, shape index: {}]   ;;  %s2077_s3 = inlined_call_operand.vmem [shape: f32[2,8,1], index: 3, kind: output, shape index: {0}]   ;;  %s2078_s4 = inlined_call_operand.hbm [shape: f32[2,8,16], index: 4, kind: output, shape index: {1}]   ;;  %s2079_s5 = inlined_call_operand.hbm [shape: f32[2,8,16], index: 5, kind: output, shape index: {2}]  }
   0x1   :  { %2080 = sst [smem:[#allocation8_spill]] %s2074_s0 }
   0x2   :  { %11 = vsyncpa [#allocation3], 0 }
   0x3   :  { %13 = vsyncpa [#allocation3 + $0x1], 0 }
   0x4   :  { %14 = vsyncpa [#allocation5], 0 }
   0x5   :  { %16 = vsyncpa [#allocation5 + $0x1], 0  ;;  %s1440_s18 = smov 0   ;;  %s1442_s19 = smov 0  }
   0x6   :  { %s1444_s20 = smov 0   ;;  %s1446_s21 = smov 0  }
   0x7   :  { %s1448_s22 = smov 0   ;;  %s1450_s23 = smov 0  }
   0x8 LB: > { %s1085_s24 = sadd.s32 4294967295, %s1404_s23   ;;  %s1086_s25 = sadd.s32 4294967294, %s1404_s23   ;;  %s1404_s23 = sphi %s1450_s23, %s22_s23   ;;  %s1400_s22 = sphi %s1448_s22, %s2088_s22   ;;  %s1396_s21 = sphi %s1446_s21, %s2087_s21   ;;  %s1392_s20 = sphi %s1444_s20, %s2086_s20   ;;  %s1388_s19 = sphi %s1442_s19, %s2085_s19   ;;  %s1384_s18 = sphi %s1440_s18, %s2084_s18  }
   0x9   : > { %s34_s26 = sadd.s32 1, %s1400_s22  ;;  %s149_s27 = sadd.s32 1, %s1392_s20 }
   0xa   : > { %p36_p0 = scmp.ge.s32.totalorder %s34_s26, 2  ;;  %p159_p1 = scmp.ne.s32.totalorder %s1392_s20, %s1388_s19 }
   0xb   : > { %p160_p2 = scmp.eq.s32.totalorder %s1085_s24, 1  ;;  %p165_p3 = scmp.ne.s32.totalorder %s1388_s19, %s1384_s18 }
   0xc   : > { %s2090_s26 = smov (%p36_p0, %s34_s26), 0  ;;  %p166_p5 = scmp.eq.s32.totalorder %s1086_s25, 1 }
   0xd   : > { %p1480_p4 = por %p160_p2, %p159_p1  ;;  %s146_s29 = ssub.s32 %s1400_s22, %s2090_s26 }
   0xe   : > { %p1090_p6 = scmp.ge.s32.totalorder %s1404_s23, 1  ;;  %p147_p7 = scmp.eq.s32.totalorder %s146_s29, 0 }
   0xf   : > { %p1487_p8 = por %p166_p5, %p165_p3  ;;  %p241_p9 = scmp.lt.s32.totalorder %s1404_s23, 3 }
  0x10   : > { %s1493_s6 = scalar_select %p147_p7, %s1392_s20, %s149_s27  }
  0x11   : > { %p242_p10 = pnand %p1090_p6, %p241_p9 }
  0x12   : > { %s1093_s7 = sshll.u32 (!%p242_p10), %s1396_s21, 3  ;;  %p312_p11 = scmp.lt.s32.totalorder (!%p242_p10), %s1396_s21, 1 }
  0x13   : > { %245 = sbr.rel (%p242_p10) target bundleno = 835 (0x343), region = 32  ;;  %p292_p12 = scmp.lt.s32.totalorder (!%p242_p10), %s1093_s7, 15 }
  0x14   : > { %s1498_s8 = sand.u32 (!%p242_p10), 1, %s1388_s19   ;;  %s2083_s0 = sld [smem:[#allocation8_spill]] (!%p242_p10) }
  0x15   : > { %s1091_s11 = sshll.u32 (!%p242_p10), %s1498_s8, 3  ;;  %p1098_p13 = scmp.ne.s32.totalorder (!%p242_p10), %s1396_s21, 0 }
  0x18   : > { %s313_s9 = scalar_select %p312_p11, %s1396_s21, 1  ;;  %vm320_vm0 = vcmask 7168   ;;  %vm322_vm1 = vcmask 130048   ;;  %v1406_v0 = vmov 0.0  }
  0x19   : > { %s2092_s7 = smov (!%p292_p12, %s1093_s7), 15 }
  0x1a   : > { %s1097_s10 = sshll.u32 %s313_s9, 3  ;;  %s1094_s12 = sshll.u32 %s2092_s7, 3 }
  0x1b   : > { %s1505_s15 = scalar_lea.vmem %s2077_s3, %s1097_s10  ;;  %s1510_s24 = scalar_lea.vmem %s2083_s0, %s1094_s12 }
  0x1c   : > { %s1515_s29 = scalar_lea.vmem %s2075_s1, %s1094_s12  ;;  %321 = vst.msk [vmem:[%s1505_s15] sm:$0xff] %vm320_vm0, %v1406_v0  ;;  %s1519_s7 = scalar_lea.vmem [#allocation2], %s1091_s11 }
  0x1d   : > { %323 = vst.msk [vmem:[%s1519_s7] sm:$0xff] %vm322_vm1, %v1406_v0  ;;  %s1523_s9 = scalar_lea.vmem [#allocation4], %s1091_s11  ;;  %328 = sbr.rel (%p1098_p13) target bundleno = 428 (0x1ac), region = 40 }
  0x1e   : > { %324 = vst.msk [vmem:[%s1523_s9] sm:$0xff] %vm322_vm1, %v1406_v0 }
  0x22   : > { %v1529_v1 = vld [vmem:[%s1510_s24 + $0x10] sm:$0xff]  ;;  %v1532_v2 = vld [vmem:[%s1510_s24] sm:$0xff]  ;;  %v1535_v3 = vld [vmem:[%s1510_s24 + $0x18] sm:$0xff]  ;;  %v1407_v7 = vmov 0   ;;  %v337_v56 = vlaneseq }
  0x23   : > { %v387_v4 = vsel %vm322_vm1, %v1529_v1, -inf  ;;  %v381_v5 = vsel %vm322_vm1, %v1532_v2, -inf  ;;  %v1542_v6 = vld [vmem:[%s1510_s24 + $0x8] sm:$0xff]  ;;  %1169 = vset.pattern.permute.xlu1 %v1407_v7  ;;  %1168 = vset.pattern.permute.xlu0 %v1407_v7  ;;  %v390_v8 = vsel %vm322_vm1, %v1535_v3, -inf  ;;  %v1552_v11 = vld [vmem:[%s1510_s24 + $0x20] sm:$0xff]  ;;  %v1559_v14 = vld [vmem:[%s1510_s24 + $0x38] sm:$0xff] }
  0x24   : > { %388 = vmax.xlane.f32.xlu1 %v387_v4  ;;  %382 = vmax.xlane.f32.xlu0 %v381_v5  ;;  %v384_v9 = vsel %vm322_vm1, %v1542_v6, -inf  ;;  %v1549_v10 = vld [vmem:[%s1510_s24 + $0x28] sm:$0xff]  ;;  %v393_v13 = vsel %vm322_vm1, %v1552_v11, -inf  ;;  %v1562_v15 = vld [vmem:[%s1510_s24 + $0x30] sm:$0xff]  ;;  %v402_v16 = vsel %vm322_vm1, %v1559_v14, -inf  ;;  %v1572_v19 = vld [vmem:[%s1515_s29] sm:$0xff] }
  0x25   : > { %v396_v12 = vsel %vm322_vm1, %v1549_v10, -inf  ;;  %v399_v17 = vsel %vm322_vm1, %v1562_v15, -inf  ;;  %v1569_v18 = vld [vmem:[%s1515_s29 + $0x8] sm:$0xff]  ;;  %v525_v21 = vsel %vm322_vm1, %v1572_v19, -inf  ;;  %v1579_v22 = vld [vmem:[%s1515_s29 + $0x18] sm:$0xff]  ;;  %v1582_v23 = vld [vmem:[%s1515_s29 + $0x10] sm:$0xff] }
  0x26   : > { %v528_v20 = vsel %vm322_vm1, %v1569_v18, -inf  ;;  %v534_v24 = vsel %vm322_vm1, %v1579_v22, -inf  ;;  %v531_v25 = vsel %vm322_vm1, %v1582_v23, -inf  ;;  %v1589_v26 = vld [vmem:[%s1515_s29 + $0x28] sm:$0xff]  ;;  %v1592_v27 = vld [vmem:[%s1515_s29 + $0x20] sm:$0xff]  ;;  %v1599_v30 = vld [vmem:[%s1515_s29 + $0x38] sm:$0xff] }
  0x27   : > { %v540_v28 = vsel %vm322_vm1, %v1589_v26, -inf  ;;  %v537_v29 = vsel %vm322_vm1, %v1592_v27, -inf  ;;  %v1602_v31 = vld [vmem:[%s1515_s29 + $0x30] sm:$0xff]  ;;  %v546_v32 = vsel %vm322_vm1, %v1599_v30, -inf  ;;  %v330_v34 = vld [vmem:[%s2076_s2 + $0x8] sm:$0xff]  ;;  %v329_v36 = vld [vmem:[%s2076_s2] sm:$0xff] }
  0x28   : > { %391 = vmax.xlane.f32.xlu1 %v390_v8  ;;  %385 = vmax.xlane.f32.xlu0 %v384_v9  ;;  %v543_v33 = vsel %vm322_vm1, %v1602_v31, -inf  ;;  %v331_v35 = vld [vmem:[%s2076_s2 + $0x10] sm:$0xff]  ;;  %v332_v37 = vld [vmem:[%s2076_s2 + $0x18] sm:$0xff]  ;;  %v333_v38 = vld [vmem:[%s2076_s2 + $0x20] sm:$0xff]  ;;  %v1664_v59 = vand.u32 127, %v337_v56 }
  0x29   : > { %v334_v39 = vld [vmem:[%s2076_s2 + $0x28] sm:$0xff]  ;;  %v335_v40 = vld [vmem:[%s2076_s2 + $0x30] sm:$0xff]  ;;  %v336_v41 = vld [vmem:[%s2076_s2 + $0x38] sm:$0xff] }
  0x2c   : > { %397 = vmax.xlane.f32.xlu1 %v396_v12  ;;  %394 = vmax.xlane.f32.xlu0 %v393_v13 }
  0x30   : > { %403 = vmax.xlane.f32.xlu1 %v402_v16  ;;  %400 = vmax.xlane.f32.xlu0 %v399_v17 }
  0x34   : > { %529 = vmax.xlane.f32.xlu1 %v528_v20  ;;  %526 = vmax.xlane.f32.xlu0 %v525_v21 }
  0x38   : > { %535 = vmax.xlane.f32.xlu1 %v534_v24  ;;  %532 = vmax.xlane.f32.xlu0 %v531_v25 }
  0x3c   : > { %541 = vmax.xlane.f32.xlu1 %v540_v28  ;;  %538 = vmax.xlane.f32.xlu0 %v537_v29 }
  0x40   : > { %547 = vmax.xlane.f32.xlu1 %v546_v32  ;;  %544 = vmax.xlane.f32.xlu0 %v543_v33 }
  0x51   : > { %343 = vperm.xlu1 %1169, %v330_v34  }
  0x55   : > { %346 = vperm.xlu1 %1169, %v331_v35  }
  0x56   : > { %340 = vperm.xlu0 %1168, %v329_v36  }
  0x59   : > { %349 = vperm.xlu1 %1169, %v332_v37  }
  0x5d   : > { %352 = vperm.xlu1 %1169, %v333_v38  }
  0x61   : > { %355 = vperm.xlu1 %1169, %v334_v39  }
  0x65   : > { %358 = vperm.xlu1 %1169, %v335_v40  }
  0x69   : > { %361 = vperm.xlu1 %1169, %v336_v41  }
  0xad   : > { %v1632_v42 = vpop.xlane.xlu1 %388  ;;  %v1634_v43 = vpop.xlane.xlu0 %382 }
  0xae   : > { %v407_v60 = vsub.f32 %v1529_v1, %v1632_v42  ;;  %v405_v62 = vsub.f32 %v1532_v2, %v1634_v43 }
  0xb0   : > { %v417_v4 = vmul.f32 1.442695, %v407_v60  ;;  %v413_v8 = vmul.f32 1.442695, %v405_v62 }
  0xb1   : > { %v1636_v44 = vpop.xlane.xlu1 %391  ;;  %v1638_v45 = vpop.xlane.xlu0 %385 }
  0xb2   : > { %v406_v57 = vsub.f32 %v1542_v6, %v1638_v45  ;;  %v408_v5 = vsub.f32 %v1535_v3, %v1636_v44 }
  0xb4   : > { %v415_v63 = vmul.f32 1.442695, %v406_v57 }
  0xb5   : > { %v1640_v46 = vpop.xlane.xlu1 %397  ;;  %v1642_v47 = vpop.xlane.xlu0 %394 }
  0xb6   : > { %1170 = vpow2.f32 %v415_v63  ;;  %v409_v9 = vsub.f32 %v1552_v11, %v1642_v47  ;;  %v410_v17 = vsub.f32 %v1549_v10, %v1640_v46 }
  0xb7   : > { %1172 = vpow2.f32 %v417_v4 }
  0xb8   : > { %1174 = vpow2.f32 %v413_v8  ;;  %v421_v21 = vmul.f32 1.442695, %v409_v9 }
  0xb9   : > { %v1644_v48 = vpop.xlane.xlu1 %403  ;;  %v1646_v49 = vpop.xlane.xlu0 %400 }
  0xba   : > { %v411_v24 = vsub.f32 %v1562_v15, %v1646_v49  ;;  %v412_v32 = vsub.f32 %v1559_v14, %v1644_v48 }
  0xbc   : > { %v425_v35 = vmul.f32 1.442695, %v411_v24  ;;  %v427_v38 = vmul.f32 1.442695, %v412_v32 }
  0xbd   : > { %v1648_v50 = vpop.xlane.xlu1 %529  ;;  %v1650_v51 = vpop.xlane.xlu0 %526 }
  0xbe   : > { %v549_v33 = vsub.f32 %v1572_v19, %v1650_v51  ;;  %v550_v39 = vsub.f32 %v1569_v18, %v1648_v50 }
  0xc0   : > { %v557_v40 = vmul.f32 1.442695, %v549_v33  ;;  %v559_v62 = vmul.f32 1.442695, %v550_v39 }
  0xc1   : > { %v1652_v52 = vpop.xlane.xlu1 %535  ;;  %v1654_v53 = vpop.xlane.xlu0 %532 }
  0xc2   : > { %v551_v41 = vsub.f32 %v1582_v23, %v1654_v53  ;;  %v552_v63 = vsub.f32 %v1579_v22, %v1652_v52 }
  0xc3   : > { %v1171_v57 = vpop.eup %1170 }
  0xc4   : > { %v1173_v4 = vpop.eup %1172  ;;  %v432_v9 = vsel %vm322_vm1, %v1171_v57, 0.0 }
  0xc5   : > { %v1656_v54 = vpop.xlane.xlu1 %541  ;;  %v1658_v55 = vpop.xlane.xlu0 %538 }
  0xc9   : > { %v1662_v58 = vpop.xlane.xlu1 %547  ;;  %v1668_v61 = vpop.xlane.xlu0 %544 }
  0xca   : > { %v555_v24 = vsub.f32 %v1602_v31, %v1668_v61 }
  0xcd   : > { %v1672_v0 = vpop.permute.xlu1 %343 }
  0xce   : > { %vm364_vm2 = vcmp.eq.s32.totalorder %v1664_v59, %v1672_v0 }
  0xcf   : > { %v454_v7 = vsel %vm364_vm2, %v1542_v6, 0.0  ;;  %v419_v6 = vmul.f32 1.442695, %v408_v5  ;;  %v561_v5 = vmul.f32 1.442695, %v551_v41 }
  0xd0   : > { %v464_v12 = vsel %vm322_vm1, %v454_v7, 0.0  ;;  %v553_v7 = vsub.f32 %v1592_v27, %v1658_v55 }
  0xd1   : > { %465 = vadd.xlane.f32.xlu1 %v464_v12  ;;  %v1685_v13 = vpop.permute.xlu1 %346  ;;  %v1687_v16 = vpop.permute.xlu0 %340  ;;  %1176 = vpow2.f32 %v419_v6  ;;  %v563_v6 = vmul.f32 1.442695, %v552_v63 }
  0xd2   : > { %vm365_vm3 = vcmp.eq.s32.totalorder %v1664_v59, %v1685_v13  ;;  %vm363_vm4 = vcmp.eq.s32.totalorder %v1664_v59, %v1687_v16  ;;  %1178 = vpow2.f32 %v421_v21  ;;  %v1175_v12 = vpop.eup %1174  ;;  %v565_v21 = vmul.f32 1.442695, %v553_v7 }
  0xd3   : > { %v453_v20 = vsel %vm363_vm4, %v1532_v2, 0.0  ;;  %v455_v29 = vsel %vm365_vm3, %v1529_v1, 0.0  ;;  %v423_v2 = vmul.f32 1.442695, %v410_v17  ;;  %v554_v17 = vsub.f32 %v1589_v26, %v1656_v54 }
  0xd4   : > { %v461_v25 = vsel %vm322_vm1, %v453_v20, 0.0  ;;  %v467_v36 = vsel %vm322_vm1, %v455_v29, 0.0  ;;  %v435_v20 = vsel %vm322_vm1, %v1173_v4, 0.0 }
  0xd5   : > { %v1702_v28 = vpop.permute.xlu1 %349  ;;  %462 = vadd.xlane.f32.xlu0 %v461_v25  ;;  %1180 = vpow2.f32 %v423_v2  ;;  %v429_v25 = vsel %vm322_vm1, %v1175_v12, 0.0  ;;  %v567_v32 = vmul.f32 1.442695, %v554_v17 }
  0xd6   : > { %vm366_vm5 = vcmp.eq.s32.totalorder %v1664_v59, %v1702_v28  ;;  %1182 = vpow2.f32 %v425_v35  ;;  %v569_v35 = vmul.f32 1.442695, %v555_v24 }
  0xd7   : > { %v456_v34 = vsel %vm366_vm5, %v1535_v3, 0.0  ;;  %1184 = vpow2.f32 %v427_v38  ;;  %v600_v16 = vsel %vm366_vm5, %v1579_v22, 0.0 }
  0xd8   : > { %v470_v1 = vsel %vm322_vm1, %v456_v34, 0.0  ;;  %1186 = vpow2.f32 %v557_v40  ;;  %v556_v34 = vsub.f32 %v1599_v30, %v1662_v58  ;;  %v614_v0 = vsel %vm322_vm1, %v600_v16, 0.0 }
  0xd9   : > { %471 = vadd.xlane.f32.xlu1 %v470_v1  ;;  %v1720_v37 = vpop.permute.xlu1 %352  ;;  %468 = vadd.xlane.f32.xlu0 %v467_v36  ;;  %1188 = vpow2.f32 %v559_v62 }
  0xda   : > { %vm367_vm6 = vcmp.eq.s32.totalorder %v1664_v59, %v1720_v37  ;;  %1190 = vpow2.f32 %v561_v5  ;;  %v571_v40 = vmul.f32 1.442695, %v556_v34 }
  0xdb   : > { %v457_v3 = vsel %vm367_vm6, %v1552_v11, 0.0  ;;  %1192 = vpow2.f32 %v563_v6 }
  0xdc   : > { %v473_v56 = vsel %vm322_vm1, %v457_v3, 0.0  ;;  %1194 = vpow2.f32 %v565_v21 }
  0xdd   : > { %v1733_v60 = vpop.permute.xlu1 %355  ;;  %474 = vadd.xlane.f32.xlu0 %v473_v56  ;;  %1196 = vpow2.f32 %v567_v32 }
  0xde   : > { %vm368_vm7 = vcmp.eq.s32.totalorder %v1664_v59, %v1733_v60  ;;  %1198 = vpow2.f32 %v569_v35  ;;  %v598_v35 = vsel %vm364_vm2, %v1569_v18, 0.0  ;;  %v601_v18 = vsel %vm367_vm6, %v1592_v27, 0.0 }
  0xdf   : > { %v458_v11 = vsel %vm368_vm7, %v1549_v10, 0.0  ;;  %v1177_v10 = vpop.eup %1176  ;;  %1200 = vpow2.f32 %v571_v40  ;;  %v602_v13 = vsel %vm368_vm7, %v1589_v26, 0.0 }
  0xe0   : > { %v476_v8 = vsel %vm322_vm1, %v458_v11, 0.0  ;;  %v1179_v29 = vpop.eup %1178  ;;  %v438_v2 = vsel %vm322_vm1, %v1177_v10, 0.0  ;;  %v620_v28 = vsel %vm322_vm1, %v602_v13, 0.0 }
  0xe1   : > { %477 = vadd.xlane.f32.xlu1 %v476_v8  ;;  %433 = vadd.xlane.f32.xlu0 %v432_v9  ;;  %v441_v1 = vsel %vm322_vm1, %v1179_v29, 0.0  ;;  %v359_v8 = vpop.permute.xlu1 %358 }
  0xe2   : > { %v1181_v33 = vpop.eup %1180  ;;  %vm369_vm8 = vcmp.eq.s32.totalorder %v1664_v59, %v359_v8 }
  0xe3   : > { %v1183_v36 = vpop.eup %1182  ;;  %v444_v3 = vsel %vm322_vm1, %v1181_v33, 0.0  ;;  %v597_v33 = vsel %vm363_vm4, %v1572_v19, 0.0  ;;  %v603_v22 = vsel %vm369_vm8, %v1602_v31, 0.0 }
  0xe4   : > { %v1185_v38 = vpop.eup %1184  ;;  %v447_v41 = vsel %vm322_vm1, %v1183_v36, 0.0  ;;  %v623_v37 = vsel %vm322_vm1, %v603_v22, 0.0 }
  0xe5   : > { %430 = vadd.xlane.f32.xlu1 %v429_v25  ;;  %436 = vadd.xlane.f32.xlu0 %v435_v20  ;;  %v1187_v39 = vpop.eup %1186  ;;  %v450_v57 = vsel %vm322_vm1, %v1185_v38, 0.0  ;;  %v362_v20 = vpop.permute.xlu1 %361  ;;  %v459_v25 = vsel %vm369_vm8, %v1562_v15, 0.0  ;;  %v605_v15 = vsel %vm322_vm1, %v597_v33, 0.0 }
  0xe6   : > { %v1189_v56 = vpop.eup %1188  ;;  %v573_v62 = vsel %vm322_vm1, %v1187_v39, 0.0  ;;  %vm370_vm9 = vcmp.eq.s32.totalorder %v1664_v59, %v362_v20  ;;  %v479_v32 = vsel %vm322_vm1, %v459_v25, 0.0 }
  0xe7   : > { %v1191_v63 = vpop.eup %1190  ;;  %v576_v4 = vsel %vm322_vm1, %v1189_v56, 0.0  ;;  %v604_v27 = vsel %vm370_vm9, %v1599_v30, 0.0 }
  0xe8   : > { %v1193_v11 = vpop.eup %1192  ;;  %v579_v5 = vsel %vm322_vm1, %v1191_v63, 0.0  ;;  %v626_v36 = vsel %vm322_vm1, %v604_v27, 0.0 }
  0xe9   : > { %439 = vadd.xlane.f32.xlu1 %v438_v2  ;;  %442 = vadd.xlane.f32.xlu0 %v441_v1  ;;  %v1195_v7 = vpop.eup %1194  ;;  %v582_v12 = vsel %vm322_vm1, %v1193_v11, 0.0  ;;  %v460_v2 = vsel %vm370_vm9, %v1559_v14, 0.0  ;;  %v599_v14 = vsel %vm365_vm3, %v1582_v23, 0.0  ;;  %v608_v1 = vsel %vm322_vm1, %v598_v35, 0.0 }
  0xea   : > { %v1197_v9 = vpop.eup %1196  ;;  %v585_v6 = vsel %vm322_vm1, %v1195_v7, 0.0  ;;  %v482_v34 = vsel %vm322_vm1, %v460_v2, 0.0  ;;  %v611_v19 = vsel %vm322_vm1, %v599_v14, 0.0  ;;  %v617_v23 = vsel %vm322_vm1, %v601_v18, 0.0 }
  0xeb   : > { %v1199_v17 = vpop.eup %1198  ;;  %v588_v10 = vsel %vm322_vm1, %v1197_v9, 0.0 }
  0xec   : > { %v591_v21 = vsel %vm322_vm1, %v1199_v17, 0.0  ;;  %v1201_v24 = vpop.eup %1200 }
  0xed   : > { %445 = vadd.xlane.f32.xlu1 %v444_v3  ;;  %448 = vadd.xlane.f32.xlu0 %v447_v41  ;;  %v594_v29 = vsel %vm322_vm1, %v1201_v24, 0.0 }
  0xf1   : > { %451 = vadd.xlane.f32.xlu1 %v450_v57  ;;  %574 = vadd.xlane.f32.xlu0 %v573_v62 }
  0xf5   : > { %577 = vadd.xlane.f32.xlu1 %v576_v4  ;;  %580 = vadd.xlane.f32.xlu0 %v579_v5 }
  0xf9   : > { %583 = vadd.xlane.f32.xlu1 %v582_v12  ;;  %586 = vadd.xlane.f32.xlu0 %v585_v6 }
  0xfd   : > { %589 = vadd.xlane.f32.xlu1 %v588_v10  ;;  %592 = vadd.xlane.f32.xlu0 %v591_v21 }
 0x101   : > { %595 = vadd.xlane.f32.xlu1 %v594_v29  ;;  %480 = vadd.xlane.f32.xlu0 %v479_v32 }
 0x105   : > { %483 = vadd.xlane.f32.xlu1 %v482_v34  ;;  %606 = vadd.xlane.f32.xlu0 %v605_v15 }
 0x109   : > { %609 = vadd.xlane.f32.xlu1 %v608_v1  ;;  %612 = vadd.xlane.f32.xlu0 %v611_v19 }
 0x10d   : > { %615 = vadd.xlane.f32.xlu1 %v614_v0  ;;  %618 = vadd.xlane.f32.xlu0 %v617_v23 }
 0x111   : > { %621 = vadd.xlane.f32.xlu1 %v620_v28  ;;  %624 = vadd.xlane.f32.xlu0 %v623_v37 }
 0x115   : > { %627 = vadd.xlane.f32.xlu1 %v626_v36 }
 0x15a   : > { %v1818_v26 = vpop.xlane.xlu1 %465 }
 0x15e   : > { %v1816_v38 = vpop.xlane.xlu0 %462 }
 0x162   : > { %v1820_v60 = vpop.xlane.xlu0 %468  ;;  %v1822_v31 = vpop.xlane.xlu1 %471 }
 0x166   : > { %v1824_v39 = vpop.xlane.xlu0 %474 }
 0x16a   : > { %v1826_v40 = vpop.xlane.xlu1 %477  ;;  %v434_v3 = vpop.xlane.xlu0 %433 }
 0x16b   : > { %1202 = vlog2.f32 %v434_v3 }
 0x16e   : > { %v431_v41 = vpop.xlane.xlu1 %430  ;;  %v437_v56 = vpop.xlane.xlu0 %436 }
 0x16f   : > { %1204 = vlog2.f32 %v431_v41 }
 0x170   : > { %1206 = vlog2.f32 %v437_v56 }
 0x172   : > { %v440_v59 = vpop.xlane.xlu1 %439  ;;  %v443_v30 = vpop.xlane.xlu0 %442 }
 0x173   : > { %1208 = vlog2.f32 %v440_v59 }
 0x174   : > { %1210 = vlog2.f32 %v443_v30 }
 0x176   : > { %v446_v57 = vpop.xlane.xlu1 %445  ;;  %v449_v62 = vpop.xlane.xlu0 %448 }
 0x177   : > { %1212 = vlog2.f32 %v446_v57 }
 0x178   : > { %1214 = vlog2.f32 %v449_v62  ;;  %v1203_v6 = vpop.eup %1202 }
 0x179   : > { %v488_v2 = vmul.f32 0.6931472, %v1203_v6 }
 0x17a   : > { %v452_v63 = vpop.xlane.xlu1 %451  ;;  %v575_v11 = vpop.xlane.xlu0 %574 }
 0x17b   : > { %1216 = vlog2.f32 %v452_v63  ;;  %v502_v16 = vadd.f32 %v488_v2, %v1638_v45 }
 0x17c   : > { %1218 = vlog2.f32 %v575_v11  ;;  %v1205_v17 = vpop.eup %1204 }
 0x17d   : > { %v1207_v20 = vpop.eup %1206  ;;  %v486_v0 = vmul.f32 0.6931472, %v1205_v17  ;;  %v510_v57 = vsub.f32 %v502_v16, %v1818_v26 }
 0x17e   : > { %v578_v4 = vpop.xlane.xlu1 %577  ;;  %v581_v5 = vpop.xlane.xlu0 %580  ;;  %v490_v14 = vmul.f32 0.6931472, %v1207_v20 }
 0x17f   : > { %v501_v62 = vadd.f32 %v486_v0, %v1634_v43 }
 0x180   : > { %v1209_v10 = vpop.eup %1208  ;;  %v503_v37 = vadd.f32 %v490_v14, %v1632_v42 }
 0x181   : > { %v1211_v25 = vpop.eup %1210  ;;  %v492_v23 = vmul.f32 0.6931472, %v1209_v10 }
 0x182   : > { %v584_v7 = vpop.xlane.xlu1 %583  ;;  %v587_v8 = vpop.xlane.xlu0 %586  ;;  %v494_v63 = vmul.f32 0.6931472, %v1211_v25  ;;  %v511_v42 = vsub.f32 %v503_v37, %v1820_v60 }
 0x183   : > { %1220 = vlog2.f32 %v584_v7  ;;  %v504_v45 = vadd.f32 %v492_v23, %v1636_v44 }
 0x184   : > { %1222 = vlog2.f32 %v578_v4  ;;  %v1213_v29 = vpop.eup %1212  ;;  %v505_v25 = vadd.f32 %v494_v63, %v1642_v47 }
 0x185   : > { %1224 = vlog2.f32 %v581_v5  ;;  %v1215_v32 = vpop.eup %1214  ;;  %v496_v3 = vmul.f32 0.6931472, %v1213_v29 }
 0x186   : > { %1226 = vlog2.f32 %v587_v8  ;;  %v590_v9 = vpop.xlane.xlu1 %589  ;;  %v593_v12 = vpop.xlane.xlu0 %592  ;;  %v498_v17 = vmul.f32 0.6931472, %v1215_v32 }
 0x187   : > { %1228 = vlog2.f32 %v590_v9  ;;  %v506_v6 = vadd.f32 %v496_v3, %v1640_v46 }
 0x188   : > { %1230 = vlog2.f32 %v593_v12  ;;  %v1217_v33 = vpop.eup %1216 }
 0x189   : > { %v1219_v35 = vpop.eup %1218  ;;  %v500_v20 = vmul.f32 0.6931472, %v1217_v33  ;;  %v514_v47 = vsub.f32 %v506_v6, %v1826_v40 }
 0x18a   : > { %v596_v21 = vpop.xlane.xlu1 %595  ;;  %v1828_v24 = vpop.xlane.xlu0 %480  ;;  %v630_v11 = vmul.f32 0.6931472, %v1219_v35 }
 0x18b   : > { %1232 = vlog2.f32 %v596_v21  ;;  %v508_v14 = vadd.f32 %v500_v20, %v1644_v48 }
 0x18c   : > { %v645_v29 = vadd.f32 %v630_v11, %v1650_v51 }
 0x18e   : > { %v1830_v34 = vpop.xlane.xlu1 %483  ;;  %v1832_v15 = vpop.xlane.xlu0 %606 }
 0x190   : > { %v1221_v1 = vpop.eup %1220 }
 0x191   : > { %v1223_v19 = vpop.eup %1222  ;;  %v636_v27 = vmul.f32 0.6931472, %v1221_v1 }
 0x192   : > { %v1225_v18 = vpop.eup %1224  ;;  %v610_v13 = vpop.xlane.xlu1 %609  ;;  %v632_v41 = vmul.f32 0.6931472, %v1223_v19 }
 0x193   : > { %v613_v22 = vpop.xlane.xlu0 %612  ;;  %v1227_v28 = vpop.eup %1226  ;;  %v634_v59 = vmul.f32 0.6931472, %v1225_v18  ;;  %v648_v9 = vadd.f32 %v636_v27, %v1652_v52  ;;  %v512_v52 = vsub.f32 %v504_v45, %v1822_v31  ;;  %v509_v18 = vsub.f32 %v501_v62, %v1816_v38  ;;  %v371_v38 = vld [vmem:[%s1505_s15] sm:$0xff] }
 0x194   : > { %v1229_v36 = vpop.eup %1228  ;;  %v638_v7 = vmul.f32 0.6931472, %v1227_v28  ;;  %v646_v26 = vadd.f32 %v632_v41, %v1648_v50 }
 0x195   : > { %v1231_v56 = vpop.eup %1230  ;;  %v640_v30 = vmul.f32 0.6931472, %v1229_v36  ;;  %v647_v44 = vadd.f32 %v634_v59, %v1654_v53  ;;  %v507_v53 = vadd.f32 %v498_v17, %v1646_v49 }
 0x196   : > { %v616_v4 = vpop.xlane.xlu1 %615  ;;  %v642_v8 = vmul.f32 0.6931472, %v1231_v56  ;;  %v654_v60 = vsub.f32 %v646_v26, %v610_v13  ;;  %v649_v32 = vadd.f32 %v638_v7, %v1658_v55  ;;  %v516_v55 = vsub.f32 %v508_v14, %v1830_v34 }
 0x197   : > { %v619_v5 = vpop.xlane.xlu0 %618  ;;  %v656_v10 = vsub.f32 %v648_v9, %v616_v4  ;;  %v650_v21 = vadd.f32 %v640_v30, %v1656_v54  ;;  %v655_v46 = vsub.f32 %v647_v44, %v613_v22  ;;  %v653_v54 = vsub.f32 %v645_v29, %v1832_v15 }
 0x198   : > { %v1233_v12 = vpop.eup %1232  ;;  %v651_v50 = vadd.f32 %v642_v8, %v1668_v61  ;;  %v657_v1 = vsub.f32 %v649_v32, %v619_v5  ;;  %v515_v16 = vsub.f32 %v507_v53, %v1828_v24  ;;  %v513_v61 = vsub.f32 %v505_v25, %v1824_v39 }
 0x199   : > { %v644_v43 = vmul.f32 0.6931472, %v1233_v12  ;;  %v664_v51 = vadd.f32 %v656_v10, %v512_v52  ;;  %v662_v48 = vadd.f32 %v654_v60, %v510_v57  ;;  %v663_v0 = vadd.f32 %v655_v46, %v511_v42 }
 0x19a   : > { %v622_v2 = vpop.xlane.xlu1 %621  ;;  %v661_v23 = vadd.f32 %v653_v54, %v509_v18  ;;  %v665_v22 = vadd.f32 %v657_v1, %v513_v61 }
 0x19b   : > { %v625_v35 = vpop.xlane.xlu0 %624  ;;  %v658_v33 = vsub.f32 %v650_v21, %v622_v2  ;;  %v652_v31 = vadd.f32 %v644_v43, %v1662_v58  ;;  %v670_v13 = vadd.f32 %v664_v51, %v663_v0 }
 0x19c   : > { %v659_v19 = vsub.f32 %v651_v50, %v625_v35  ;;  %v669_v37 = vadd.f32 %v662_v48, %v661_v23 }
 0x19d   : > { %v666_v15 = vadd.f32 %v658_v33, %v514_v47 }
 0x19e   : > { %v628_v49 = vpop.xlane.xlu1 %627  ;;  %v667_v28 = vadd.f32 %v659_v19, %v515_v16  ;;  %v673_v34 = vadd.f32 %v670_v13, %v669_v37 }
 0x19f   : > { %v660_v40 = vsub.f32 %v652_v31, %v628_v49  ;;  %v671_v24 = vadd.f32 %v666_v15, %v665_v22 }
 0x1a1   : > { %v668_v58 = vadd.f32 %v660_v40, %v516_v55 }
 0x1a3   : > { %v672_v27 = vadd.f32 %v668_v58, %v667_v28 }
 0x1a5   : > { %v674_v36 = vadd.f32 %v672_v27, %v671_v24 }
 0x1a7   : > { %v675_v3 = vadd.f32 %v674_v36, %v673_v34 }
 0x1a9   : > { %v676_v39 = vadd.f32 %v675_v3, %v371_v38 }
 0x1ab   : > { %678 = vst.msk [vmem:[%s1505_s15] sm:$0xff] %vm320_vm0, %v676_v39 }
 0x1ac PF: > { %p1099_p0 = scmp.ne.s32.totalorder %s1396_s21, 1 }
 0x1ae   : > { %682 = sbr.rel (%p1099_p0) target bundleno = 789 (0x315), region = 44 }
 0x1b3   : > { %v684_v41 = vld [vmem:[%s1510_s24] sm:$0xff]  ;;  %v686_v56 = vld [vmem:[%s1510_s24 + $0x10] sm:$0xff]  ;;  %v685_v59 = vld [vmem:[%s1510_s24 + $0x8] sm:$0xff] }
 0x1b4   : > { %v693_v30 = vsel %vm322_vm1, %v684_v41, -inf  ;;  %v699_v57 = vsel %vm322_vm1, %v686_v56, -inf  ;;  %v687_v62 = vld [vmem:[%s1510_s24 + $0x18] sm:$0xff]  ;;  %v696_v45 = vsel %vm322_vm1, %v685_v59, -inf  ;;  %v688_v11 = vld [vmem:[%s1510_s24 + $0x20] sm:$0xff]  ;;  %v689_v4 = vld [vmem:[%s1510_s24 + $0x28] sm:$0xff] }
 0x1b5   : > { %694 = vmax.xlane.f32.xlu0 %v693_v30  ;;  %700 = vmax.xlane.f32.xlu1 %v699_v57  ;;  %v702_v63 = vsel %vm322_vm1, %v687_v62, -inf  ;;  %v705_v5 = vsel %vm322_vm1, %v688_v11, -inf  ;;  %v708_v7 = vsel %vm322_vm1, %v689_v4, -inf  ;;  %v690_v8 = vld [vmem:[%s1510_s24 + $0x30] sm:$0xff]  ;;  %v691_v42 = vld [vmem:[%s1510_s24 + $0x38] sm:$0xff]  ;;  %v1880_v6 = vld [vmem:[%s1515_s29] sm:$0xff] }
 0x1b6   : > { %v711_v9 = vsel %vm322_vm1, %v690_v8, -inf  ;;  %v714_v12 = vsel %vm322_vm1, %v691_v42, -inf  ;;  %v1883_v17 = vld [vmem:[%s1515_s29 + $0x8] sm:$0xff]  ;;  %v799_v20 = vsel %vm322_vm1, %v1880_v6, -inf  ;;  %v1890_v43 = vld [vmem:[%s1515_s29 + $0x10] sm:$0xff]  ;;  %v1893_v44 = vld [vmem:[%s1515_s29 + $0x18] sm:$0xff] }
 0x1b7   : > { %v802_v26 = vsel %vm322_vm1, %v1883_v17, -inf  ;;  %v805_v10 = vsel %vm322_vm1, %v1890_v43, -inf  ;;  %v808_v21 = vsel %vm322_vm1, %v1893_v44, -inf  ;;  %v1900_v25 = vld [vmem:[%s1515_s29 + $0x20] sm:$0xff]  ;;  %v1903_v29 = vld [vmem:[%s1515_s29 + $0x28] sm:$0xff]  ;;  %v1910_v2 = vld [vmem:[%s1515_s29 + $0x30] sm:$0xff] }
 0x1b8   : > { %v811_v60 = vsel %vm322_vm1, %v1900_v25, -inf  ;;  %v814_v52 = vsel %vm322_vm1, %v1903_v29, -inf  ;;  %v1913_v35 = vld [vmem:[%s1515_s29 + $0x38] sm:$0xff]  ;;  %v817_v46 = vsel %vm322_vm1, %v1910_v2, -inf }
 0x1b9   : > { %697 = vmax.xlane.f32.xlu0 %v696_v45  ;;  %703 = vmax.xlane.f32.xlu1 %v702_v63  ;;  %v820_v32 = vsel %vm322_vm1, %v1913_v35, -inf }
 0x1bd   : > { %706 = vmax.xlane.f32.xlu0 %v705_v5  ;;  %709 = vmax.xlane.f32.xlu1 %v708_v7 }
 0x1c1   : > { %712 = vmax.xlane.f32.xlu0 %v711_v9  ;;  %715 = vmax.xlane.f32.xlu1 %v714_v12 }
 0x1c5   : > { %800 = vmax.xlane.f32.xlu0 %v799_v20  ;;  %803 = vmax.xlane.f32.xlu1 %v802_v26 }
 0x1c9   : > { %806 = vmax.xlane.f32.xlu0 %v805_v10  ;;  %809 = vmax.xlane.f32.xlu1 %v808_v21 }
 0x1cd   : > { %812 = vmax.xlane.f32.xlu0 %v811_v60  ;;  %815 = vmax.xlane.f32.xlu1 %v814_v52 }
 0x1d1   : > { %818 = vmax.xlane.f32.xlu0 %v817_v46  ;;  %821 = vmax.xlane.f32.xlu1 %v820_v32 }
 0x23e   : > { %v695_v33 = vpop.xlane.xlu0 %694  ;;  %v701_v50 = vpop.xlane.xlu1 %700 }
 0x23f   : > { %v717_v53 = vsub.f32 %v684_v41, %v695_v33  ;;  %v719_v14 = vsub.f32 %v686_v56, %v701_v50 }
 0x241   : > { %v725_v54 = vmul.f32 1.442695, %v717_v53  ;;  %v729_v47 = vmul.f32 1.442695, %v719_v14 }
 0x242   : > { %v698_v51 = vpop.xlane.xlu0 %697  ;;  %v704_v1 = vpop.xlane.xlu1 %703 }
 0x243   : > { %1234 = vpow2.f32 %v725_v54  ;;  %v718_v19 = vsub.f32 %v685_v59, %v698_v51  ;;  %v720_v31 = vsub.f32 %v687_v62, %v704_v1 }
 0x244   : > { %1236 = vpow2.f32 %v729_v47 }
 0x245   : > { %v727_v16 = vmul.f32 1.442695, %v718_v19  ;;  %v731_v55 = vmul.f32 1.442695, %v720_v31 }
 0x246   : > { %v707_v18 = vpop.xlane.xlu0 %706  ;;  %v710_v61 = vpop.xlane.xlu1 %709 }
 0x247   : > { %1238 = vpow2.f32 %v727_v16  ;;  %v721_v49 = vsub.f32 %v688_v11, %v707_v18  ;;  %v722_v48 = vsub.f32 %v689_v4, %v710_v61 }
 0x248   : > { %1240 = vpow2.f32 %v731_v55 }
 0x249   : > { %v733_v0 = vmul.f32 1.442695, %v721_v49  ;;  %v735_v15 = vmul.f32 1.442695, %v722_v48 }
 0x24a   : > { %v713_v40 = vpop.xlane.xlu0 %712  ;;  %v716_v23 = vpop.xlane.xlu1 %715 }
 0x24b   : > { %1242 = vpow2.f32 %v733_v0  ;;  %v723_v13 = vsub.f32 %v690_v8, %v713_v40  ;;  %v724_v22 = vsub.f32 %v691_v42, %v716_v23 }
 0x24c   : > { %1244 = vpow2.f32 %v735_v15 }
 0x24d   : > { %v737_v28 = vmul.f32 1.442695, %v723_v13  ;;  %v739_v58 = vmul.f32 1.442695, %v724_v22 }
 0x24e   : > { %v801_v37 = vpop.xlane.xlu0 %800  ;;  %v804_v24 = vpop.xlane.xlu1 %803 }
 0x24f   : > { %1246 = vpow2.f32 %v737_v28  ;;  %v823_v27 = vsub.f32 %v1880_v6, %v801_v37  ;;  %v824_v34 = vsub.f32 %v1883_v17, %v804_v24 }
 0x250   : > { %v1921_v36 = vpop.eup %1234  ;;  %1248 = vpow2.f32 %v739_v58 }
 0x251   : > { %v1923_v38 = vpop.eup %1236  ;;  %v831_v3 = vmul.f32 1.442695, %v823_v27  ;;  %v833_v39 = vmul.f32 1.442695, %v824_v34  ;;  %v741_v41 = vsel %vm322_vm1, %v1921_v36, 0.0 }
 0x252   : > { %742 = vadd.xlane.f32.xlu0 %v741_v41  ;;  %v807_v56 = vpop.xlane.xlu0 %806  ;;  %v810_v59 = vpop.xlane.xlu1 %809  ;;  %v747_v62 = vsel %vm322_vm1, %v1923_v38, 0.0 }
 0x253   : > { %1250 = vpow2.f32 %v831_v3  ;;  %v825_v30 = vsub.f32 %v1890_v43, %v807_v56  ;;  %v826_v57 = vsub.f32 %v1893_v44, %v810_v59 }
 0x254   : > { %v1931_v45 = vpop.eup %1238  ;;  %1252 = vpow2.f32 %v833_v39 }
 0x255   : > { %v1933_v63 = vpop.eup %1240  ;;  %v835_v11 = vmul.f32 1.442695, %v825_v30  ;;  %v837_v4 = vmul.f32 1.442695, %v826_v57  ;;  %v744_v5 = vsel %vm322_vm1, %v1931_v45, 0.0 }
 0x256   : > { %748 = vadd.xlane.f32.xlu0 %v747_v62  ;;  %745 = vadd.xlane.f32.xlu1 %v744_v5  ;;  %v813_v7 = vpop.xlane.xlu0 %812  ;;  %v816_v8 = vpop.xlane.xlu1 %815  ;;  %v750_v12 = vsel %vm322_vm1, %v1933_v63, 0.0 }
 0x257   : > { %1254 = vpow2.f32 %v835_v11  ;;  %v827_v42 = vsub.f32 %v1900_v25, %v813_v7  ;;  %v828_v9 = vsub.f32 %v1903_v29, %v816_v8 }
 0x258   : > { %v1941_v6 = vpop.eup %1242  ;;  %1256 = vpow2.f32 %v837_v4 }
 0x259   : > { %v1943_v17 = vpop.eup %1244  ;;  %v839_v20 = vmul.f32 1.442695, %v827_v42  ;;  %v841_v26 = vmul.f32 1.442695, %v828_v9  ;;  %v753_v43 = vsel %vm322_vm1, %v1941_v6, 0.0 }
 0x25a   : > { %751 = vadd.xlane.f32.xlu1 %v750_v12  ;;  %754 = vadd.xlane.f32.xlu0 %v753_v43  ;;  %v819_v44 = vpop.xlane.xlu0 %818  ;;  %v822_v10 = vpop.xlane.xlu1 %821  ;;  %v756_v29 = vsel %vm322_vm1, %v1943_v17, 0.0 }
 0x25b   : > { %1258 = vpow2.f32 %v839_v20  ;;  %v829_v21 = vsub.f32 %v1910_v2, %v819_v44  ;;  %v830_v25 = vsub.f32 %v1913_v35, %v822_v10 }
 0x25c   : > { %v1951_v60 = vpop.eup %1246  ;;  %1260 = vpow2.f32 %v841_v26 }
 0x25d   : > { %v1953_v52 = vpop.eup %1248  ;;  %v843_v46 = vmul.f32 1.442695, %v829_v21  ;;  %v845_v32 = vmul.f32 1.442695, %v830_v25  ;;  %v759_v33 = vsel %vm322_vm1, %v1951_v60, 0.0  ;;  %v683_v25 = vld [vmem:[%s1519_s7] sm:$0xff] }
 0x25e   : > { %757 = vadd.xlane.f32.xlu1 %v756_v29  ;;  %760 = vadd.xlane.f32.xlu0 %v759_v33  ;;  %v762_v2 = vsel %vm322_vm1, %v1953_v52, 0.0 }
 0x25f   : > { %1262 = vpow2.f32 %v843_v46 }
 0x260   : > { %v1959_v35 = vpop.eup %1250  ;;  %1264 = vpow2.f32 %v845_v32 }
 0x261   : > { %v1961_v50 = vpop.eup %1252  ;;  %v847_v53 = vsel %vm322_vm1, %v1959_v35, 0.0 }
 0x262   : > { %763 = vadd.xlane.f32.xlu1 %v762_v2  ;;  %848 = vadd.xlane.f32.xlu0 %v847_v53  ;;  %v850_v14 = vsel %vm322_vm1, %v1961_v50, 0.0 }
 0x264   : > { %v1967_v54 = vpop.eup %1254 }
 0x265   : > { %v1969_v47 = vpop.eup %1256  ;;  %v853_v51 = vsel %vm322_vm1, %v1967_v54, 0.0 }
 0x266   : > { %851 = vadd.xlane.f32.xlu1 %v850_v14  ;;  %854 = vadd.xlane.f32.xlu0 %v853_v51  ;;  %v856_v1 = vsel %vm322_vm1, %v1969_v47, 0.0 }
 0x268   : > { %v1975_v19 = vpop.eup %1258 }
 0x269   : > { %v1977_v31 = vpop.eup %1260  ;;  %v859_v16 = vsel %vm322_vm1, %v1975_v19, 0.0 }
 0x26a   : > { %857 = vadd.xlane.f32.xlu1 %v856_v1  ;;  %860 = vadd.xlane.f32.xlu0 %v859_v16  ;;  %v862_v55 = vsel %vm322_vm1, %v1977_v31, 0.0 }
 0x26c   : > { %v1983_v18 = vpop.eup %1262 }
 0x26d   : > { %v1985_v61 = vpop.eup %1264  ;;  %v865_v49 = vsel %vm322_vm1, %v1983_v18, 0.0 }
 0x26e   : > { %863 = vadd.xlane.f32.xlu1 %v862_v55  ;;  %866 = vadd.xlane.f32.xlu0 %v865_v49  ;;  %v868_v48 = vsel %vm322_vm1, %v1985_v61, 0.0 }
 0x272   : > { %869 = vadd.xlane.f32.xlu1 %v868_v48 }
 0x2db   : > { %v743_v0 = vpop.xlane.xlu0 %742 }
 0x2dc   : > { %1266 = vrcp.f32 %v743_v0 }
 0x2df   : > { %v746_v15 = vpop.xlane.xlu1 %745  ;;  %v749_v40 = vpop.xlane.xlu0 %748 }
 0x2e0   : > { %1268 = vrcp.f32 %v746_v15 }
 0x2e3   : > { %v752_v23 = vpop.xlane.xlu1 %751  ;;  %v755_v13 = vpop.xlane.xlu0 %754 }
 0x2e4   : > { %1270 = vrcp.f32 %v752_v23 }
 0x2e5   : > { %1272 = vrcp.f32 %v749_v40 }
 0x2e7   : > { %v758_v22 = vpop.xlane.xlu1 %757  ;;  %v761_v28 = vpop.xlane.xlu0 %760 }
 0x2e8   : > { %1274 = vrcp.f32 %v758_v22  ;;  %v790_v22 = vld [vmem:[%s1523_s9] sm:$0xff] }
 0x2e9   : > { %1276 = vrcp.f32 %v755_v13  ;;  %v1267_v34 = vpop.eup %1266 }
 0x2ea   : > { %1278 = vrcp.f32 %v761_v28  ;;  %v773_v12 = vmul.f32 %v1267_v34, %v1921_v36 }
 0x2eb   : > { %v764_v58 = vpop.xlane.xlu1 %763  ;;  %v849_v37 = vpop.xlane.xlu0 %848 }
 0x2ec   : > { %1280 = vrcp.f32 %v764_v58 }
 0x2ed   : > { %v1269_v3 = vpop.eup %1268  ;;  %1282 = vrcp.f32 %v849_v37 }
 0x2ee   : > { %v774_v7 = vmul.f32 %v1269_v3, %v1931_v45 }
 0x2ef   : > { %v852_v24 = vpop.xlane.xlu1 %851  ;;  %v855_v27 = vpop.xlane.xlu0 %854 }
 0x2f0   : > { %1284 = vrcp.f32 %v852_v24  ;;  %v781_v44 = vadd.f32 %v774_v7, %v773_v12 }
 0x2f1   : > { %v1271_v39 = vpop.eup %1270 }
 0x2f2   : > { %v1273_v59 = vpop.eup %1272  ;;  %v776_v62 = vmul.f32 %v1271_v39, %v1933_v63 }
 0x2f3   : > { %v858_v41 = vpop.xlane.xlu1 %857  ;;  %v861_v56 = vpop.xlane.xlu0 %860  ;;  %v775_v8 = vmul.f32 %v1273_v59, %v1923_v38 }
 0x2f4   : > { %1286 = vrcp.f32 %v858_v41 }
 0x2f5   : > { %v1275_v30 = vpop.eup %1274  ;;  %1288 = vrcp.f32 %v855_v27  ;;  %v782_v63 = vadd.f32 %v776_v62, %v775_v8 }
 0x2f6   : > { %v1277_v57 = vpop.eup %1276  ;;  %v778_v42 = vmul.f32 %v1275_v30, %v1943_v17 }
 0x2f7   : > { %v1279_v11 = vpop.eup %1278  ;;  %v864_v4 = vpop.xlane.xlu1 %863  ;;  %v777_v20 = vmul.f32 %v1277_v57, %v1941_v6  ;;  %v785_v17 = vadd.f32 %v782_v63, %v781_v44 }
 0x2f8   : > { %v867_v5 = vpop.xlane.xlu0 %866  ;;  %1290 = vrcp.f32 %v864_v4  ;;  %v779_v26 = vmul.f32 %v1279_v11, %v1951_v60 }
 0x2f9   : > { %v1281_v9 = vpop.eup %1280  ;;  %1292 = vrcp.f32 %v861_v56  ;;  %v783_v38 = vadd.f32 %v778_v42, %v777_v20 }
 0x2fa   : > { %v780_v43 = vmul.f32 %v1281_v9, %v1953_v52  ;;  %1294 = vrcp.f32 %v867_v5  ;;  %v1283_v36 = vpop.eup %1282 }
 0x2fb   : > { %v870_v45 = vpop.xlane.xlu1 %869  ;;  %v879_v55 = vmul.f32 %v1283_v36, %v1959_v35 }
 0x2fc   : > { %v784_v10 = vadd.f32 %v780_v43, %v779_v26  ;;  %1296 = vrcp.f32 %v870_v45 }
 0x2fd   : > { %v1285_v46 = vpop.eup %1284 }
 0x2fe   : > { %v786_v21 = vadd.f32 %v784_v10, %v783_v38  ;;  %v880_v14 = vmul.f32 %v1285_v46, %v1961_v50 }
 0x300   : > { %v787_v29 = vadd.f32 %v786_v21, %v785_v17 }
 0x301   : > { %v1287_v32 = vpop.eup %1286 }
 0x302   : > { %v788_v6 = vadd.f32 %v787_v29, %v683_v25  ;;  %v1289_v33 = vpop.eup %1288  ;;  %v882_v2 = vmul.f32 %v1287_v32, %v1969_v47  ;;  %v887_v47 = vadd.f32 %v880_v14, %v879_v55 }
 0x303   : > { %v881_v51 = vmul.f32 %v1289_v33, %v1967_v54 }
 0x304   : > { %789 = vst.msk [vmem:[%s1519_s7] sm:$0xff] %vm322_vm1, %v788_v6 }
 0x305   : > { %v1291_v60 = vpop.eup %1290  ;;  %v888_v49 = vadd.f32 %v882_v2, %v881_v51 }
 0x306   : > { %v1293_v52 = vpop.eup %1292  ;;  %v884_v1 = vmul.f32 %v1291_v60, %v1977_v31 }
 0x307   : > { %v1295_v53 = vpop.eup %1294  ;;  %v883_v48 = vmul.f32 %v1293_v52, %v1975_v19  ;;  %v891_v13 = vadd.f32 %v888_v49, %v887_v47 }
 0x308   : > { %v885_v0 = vmul.f32 %v1295_v53, %v1983_v18 }
 0x309   : > { %v1297_v16 = vpop.eup %1296  ;;  %v889_v40 = vadd.f32 %v884_v1, %v883_v48 }
 0x30a   : > { %v886_v15 = vmul.f32 %v1297_v16, %v1985_v61 }
 0x30c   : > { %v890_v23 = vadd.f32 %v886_v15, %v885_v0 }
 0x30e   : > { %v892_v50 = vadd.f32 %v890_v23, %v889_v40 }
 0x310   : > { %v893_v54 = vadd.f32 %v892_v50, %v891_v13 }
 0x312   : > { %v894_v28 = vadd.f32 %v893_v54, %v790_v22 }
 0x314   : > { %895 = vst.msk [vmem:[%s1523_s9] sm:$0xff] %vm322_vm1, %v894_v28 }
 0x315 PF: > { %s1102_s0 = sshll.u32 %s1396_s21, 7  ;;  %s922_s17 = sshll.u32 %s1519_s7, 4  ;;  %s923_s17 = int_to_ptr.vmem [resolvable:$true] %s922_s17 }
 0x316   : > { %s920_s29 = scalar_lea.hbm %s2078_s4, %s1102_s0  ;;  %s901_s25 = scalar_lea.sflag [#allocation3], %s1498_s8 }
 0x317   : > { %s1298_s27 = scalar_lea.vmem %s923_s17, 128  ;;  %s1408_s10 = smov [#allocation2]  }
 0x318   : > { %p1299_p1 = scmp.ne.s32.totalorder %s923_s17, %s1298_s27  ;;  %s1302_s11 = sshll.u32 %s1408_s10, 4  ;;  %s1303_s11 = int_to_ptr.vmem [resolvable:$false] %s1302_s11 }
 0x319   : > { %s1304_s12 = scalar_lea.vmem %s1303_s11, 256  ;;  %p1305_p5 = scmp.lt.s32.totalorder %s923_s17, %s1303_s11 }
 0x31a   : > { %p1300_p2 = pnand %p1299_p1, %p1480_p4  ;;  %p1306_p6 = scmp.lt.s32.totalorder %s1304_s12, %s1298_s27 }
 0x31c   : > { %p1301_p3 = pneg %p1300_p2  ;;  %p1307_p7 = por %p1306_p6, %p1305_p5 }
 0x31e   : > { %p1308_p9 = pnand %p1307_p7, %p1301_p3 }
 0x320   : > { %1311 = shalt.err (!%p1308_p9)
}
 0x321   : > { %s1312_s13 = scalar_lea.hbm %s920_s29, 128  ;;  %s1316_s16 = scalar_lea.hbm %s2078_s4, 256 }
 0x322   : > { %p1313_p10 = scmp.ne.s32.totalorder %s920_s29, %s1312_s13  ;;  %p1317_p13 = scmp.lt.s32.totalorder %s920_s29, %s2078_s4 }
 0x323   : > { %p1318_p0 = scmp.lt.s32.totalorder %s1316_s16, %s1312_s13 }
 0x324   : > { %p1314_p11 = pnand %p1313_p10, %p1480_p4 }
 0x325   : > { %p1319_p1 = por %p1318_p0, %p1317_p13 }
 0x326   : > { %p1315_p12 = pneg %p1314_p11 }
 0x328   : > { %p1320_p2 = pnand %p1319_p1, %p1315_p12 }
 0x32a   : > { %1323 = shalt.err (!%p1320_p2)
}
 0x32b   : > { %1106 = dma.vmem_to_hbm [thread:$0]  (%p1480_p4), %s923_s17, 128, %s920_s29, %s901_s25  }
 0x32c   : > { %s933_s11 = scalar_lea.hbm %s2079_s5, %s1102_s0  ;;  %s935_s12 = sshll.u32 %s1523_s9, 4  ;;  %s936_s12 = int_to_ptr.vmem [resolvable:$true] %s935_s12 }
 0x32d   : > { %s906_s7 = scalar_lea.sflag [#allocation5], %s1498_s8  ;;  %s1324_s14 = scalar_lea.vmem %s936_s12, 128 }
 0x32e   : > { %p1325_p3 = scmp.ne.s32.totalorder %s936_s12, %s1324_s14  ;;  %s1409_s13 = smov [#allocation4]  }
 0x32f   : > { %s1328_s16 = sshll.u32 %s1409_s13, 4  ;;  %s1329_s16 = int_to_ptr.vmem [resolvable:$false] %s1328_s16 }
 0x330   : > { %p1326_p5 = pnand %p1325_p3, %p1480_p4  ;;  %s1330_s15 = scalar_lea.vmem %s1329_s16, 256 }
 0x331   : > { %p1331_p7 = scmp.lt.s32.totalorder %s936_s12, %s1329_s16  ;;  %p1332_p9 = scmp.lt.s32.totalorder %s1330_s15, %s1324_s14 }
 0x332   : > { %p1327_p6 = pneg %p1326_p5 }
 0x333   : > { %p1333_p10 = por %p1332_p9, %p1331_p7 }
 0x335   : > { %p1334_p11 = pnand %p1333_p10, %p1327_p6 }
 0x337   : > { %1337 = shalt.err (!%p1334_p11)
}
 0x338   : > { %s1338_s21 = scalar_lea.hbm %s933_s11, 128  ;;  %s1342_s0 = scalar_lea.hbm %s2079_s5, 256 }
 0x339   : > { %p1339_p12 = scmp.ne.s32.totalorder %s933_s11, %s1338_s21  ;;  %p1343_p1 = scmp.lt.s32.totalorder %s933_s11, %s2079_s5 }
 0x33a   : > { %p1344_p2 = scmp.lt.s32.totalorder %s1342_s0, %s1338_s21 }
 0x33b   : > { %p1340_p13 = pnand %p1339_p12, %p1480_p4 }
 0x33c   : > { %p1345_p3 = por %p1344_p2, %p1343_p1 }
 0x33d   : > { %p1341_p0 = pneg %p1340_p13 }
 0x33f   : > { %p1346_p5 = pnand %p1345_p3, %p1341_p0 }
 0x341   : > { %1349 = shalt.err (!%p1346_p5)
}
 0x342   : > { %1107 = dma.vmem_to_hbm [thread:$0]  (%p1480_p4), %s936_s12, 128, %s933_s11, %s906_s7  }
 0x343 PF: > { %p1117_p6 = scmp.ge.s32.totalorder %s1404_s23, 2  ;;  %s954_s25 = sand.u32 1, %s1384_s18  }
 0x344   : > { %s955_s24 = scalar_lea.sflag [#allocation3], %s954_s25 }
 0x345   : > { %p1111_p7 = pnand %p1117_p6, %p1487_p8 }
 0x347   : > { %p1112_p9 = pneg %p1111_p7 }
 0x349   : > { %1375 = dma.done.wait (%p1112_p9), %s955_s24, 128  }
 0x34a   : > { %1377 = vsyncadd (%p1112_p9), %s955_s24, 4294967168  ;;  %s964_s27 = scalar_lea.sflag [#allocation5], %s954_s25 }
 0x34b   : > { %1379 = dma.done.wait (%p1112_p9), %s964_s27, 128  }
 0x34c   : > { %1381 = vsyncadd (%p1112_p9), %s964_s27, 4294967168  ;;  %s22_s23 = sadd.s32 1, %s1404_s23   ;;  %s2084_s18 = smov %s1388_s19 }
 0x34d   : > { %p19_p10 = scmp.ge.s32.totalorder %s22_s23, 4   ;;  %s2085_s19 = smov %s1392_s20 }
 0x34e   : > { %s2086_s20 = smov %s1493_s6  ;;  %s2087_s21 = smov %s1400_s22 }
 0x34f   : > { %s2088_s22 = smov %s2090_s26  ;;  %21 = sbr.rel (!%p19_p10) target bundleno = 8 (0x8), region = 114 }
 0x354   :  { %969 = vsyncpa [#allocation3], 1 }
 0x355   :  { %971 = vsyncpa [#allocation3 + $0x1], 1 }
 0x356   :  { %972 = vsyncpa [#allocation5], 1 }
 0x357   :  { %974 = vsyncpa [#allocation5 + $0x1], 1 }

</bundles_post_ra>
